<compile_context>
chip_gen: v7x
topology: tpu7x:2x2x1
jax: 0.10.0
libtpu: 0.0.40
codegen_flags: <defaults>
</compile_context>

<pallas_src>
import functools
import math

import jax
import jax.numpy as jnp
from jax import lax
from jax.experimental import pallas as pl
from jax.experimental.pallas import tpu as pltpu


def _round_up(n: int, m: int) -> int:
    return ((n + m - 1) // m) * m


def _posenc_kernel(x_ref, out_ref, *, dim: int):
    # x_ref: (TR, 1) float32 timestamps; out_ref: (TR, dim) float32.
    h = x_ref[...] / 3600.0                                   # (TR, 1)
    # .long() in torch truncates toward zero.
    t = jnp.where(h < 0.0, jnp.ceil(h), jnp.floor(h))         # (TR, 1)

    col = lax.broadcasted_iota(jnp.int32, (1, dim), 1)        # (1, D)
    colf = col.astype(jnp.float32)
    # 1 / pos_i = 10000^(-i/D)  (torch: arange/2*2 with true division == arange)
    inv_pos = jnp.exp(colf * jnp.float32(-math.log(10000.0) / dim))   # (1, D)

    phase = t * inv_pos                                       # (TR, D) broadcast
    is_odd = (col % 2) == 1                                   # (1, D)
    # evens mask ([0,1,0,1,...]) keeps sin at odd i; odds mask keeps cos at even i.
    out_ref[...] = jnp.where(is_odd, jnp.sin(phase), jnp.cos(phase))


def positional_encoding(x, output_dim: int, *, row_tile: int = 256):
    """Pallas implementation of PositionalEncoding.forward.

    x:          (B, S) timestamps (any float dtype)
    returns:    (B, S, output_dim) float32
    """
    B, S = x.shape
    D = int(output_dim)
    R = B * S

    # Row tile: multiple of 8 sublanes, capped by (rounded-up) row count.
    TR = _round_up(min(row_tile, R), 8)
    R_pad = pl.cdiv(R, TR) * TR

    xr = x.reshape(R, 1).astype(jnp.float32)
    if R_pad != R:
        xr = jnp.pad(xr, ((0, R_pad - R), (0, 0)))

    kernel = functools.partial(_posenc_kernel, dim=D)

    out = pl.pallas_call(
        kernel,
        out_shape=jax.ShapeDtypeStruct((R_pad, D), jnp.float32),
        grid_spec=pltpu.PrefetchScalarGridSpec(
            num_scalar_prefetch=0,
            grid=(R_pad // TR,),
            in_specs=[pl.BlockSpec((TR, 1), lambda r: (r, 0))],
            out_specs=pl.BlockSpec((TR, D), lambda r: (r, 0)),
        ),
        compiler_params=pltpu.CompilerParams(
            dimension_semantics=("parallel",)),
    )(xr)

    return out[:R].reshape(B, S, D)


def positional_encoding_reference(x, output_dim: int):
    """Pure-JAX reference matching the PyTorch forward (in float32)."""
    B, S = x.shape
    D = int(output_dim)
    h = x.astype(jnp.float32) / 3600.0
    t = jnp.where(h < 0.0, jnp.ceil(h), jnp.floor(h))          # .long() truncation
    i = jnp.arange(D)
    evens = jnp.tile(jnp.array([0.0, 1.0], jnp.float32), D // 2)   # [0,1,0,1,...]
    odds = jnp.tile(jnp.array([1.0, 0.0], jnp.float32), D // 2)    # [1,0,1,0,...]
    pos = jnp.power(10000.0, (i / 2 * 2).astype(jnp.float32) / D)  # (D,)
    phase = t[:, :, None] / pos[None, None, :]                     # (B, S, D)
    return jnp.sin(phase) * evens + jnp.cos(phase) * odds


if __name__ == "__main__":
    D = 32                       # output_dim (must be even, matches module)
    key = jax.random.PRNGKey(0)
    k1, k2 = jax.random.split(key)

    # Small config: single grid step.
    B, S = 2, 8
    x = jax.random.uniform(k1, (B, S), jnp.float32,
                           minval=0.0, maxval=3600.0 * 128.0)
    out = positional_encoding(x, D)
    out = jax.block_until_ready(out)
    ref = positional_encoding_reference(x, D)
    assert out.shape == (B, S, D)
    assert jnp.allclose(out, ref, atol=1e-3, rtol=1e-3), "mismatch vs reference"

    # Second config: exercises multi-step grid + row padding.
    B2, S2 = 3, 50
    x2 = jax.random.uniform(k2, (B2, S2), jnp.float32,
                            minval=0.0, maxval=3600.0 * 128.0)
    out2 = positional_encoding(x2, D, row_tile=64)
    out2 = jax.block_until_ready(out2)
    ref2 = positional_encoding_reference(x2, D)
    assert out2.shape == (B2, S2, D)
    assert jnp.allclose(out2, ref2, atol=1e-3, rtol=1e-3), "mismatch vs reference (tiled)"

    print("KERNEL_OK")
</pallas_src>

<mosaic_0001>
module attributes {stable_mosaic.version = 11 : i64} {
  func.func @_posenc_kernel(%arg0: i32, %arg1: memref<16x1xf32, #tpu.memory_space<vmem>>, %arg2: memref<16x32xf32, #tpu.memory_space<vmem>>) attributes {dimension_semantics = [#tpu.dimension_semantics<parallel>], iteration_bounds = array<i64: 1>, scalar_prefetch = 0 : i64, scratch_operands = 0 : i64, tpu.core_type = #tpu.core_type<tc>, window_params = [{transform_indices = @transform_0, window_bounds = array<i64: 16, 1>}, {transform_indices = @transform_1, window_bounds = array<i64: 16, 32>}]} {
    %c0 = arith.constant 0 : index
    %c0_0 = arith.constant 0 : index
    %0 = vector.load %arg1[%c0, %c0_0] : memref<16x1xf32, #tpu.memory_space<vmem>>, vector<16x1xf32>
    %cst = arith.constant 3.600000e+03 : f32
    %1 = vector.broadcast %cst : f32 to vector<16x1xf32>
    %2 = arith.divf %0, %1 : vector<16x1xf32>
    %cst_1 = arith.constant 0.000000e+00 : f32
    %3 = vector.broadcast %cst_1 : f32 to vector<16x1xf32>
    %4 = arith.cmpf olt, %2, %3 : vector<16x1xf32>
    %5 = math.ceil %2 : vector<16x1xf32>
    %6 = math.floor %2 : vector<16x1xf32>
    %7 = arith.select %4, %5, %6 : vector<16x1xi1>, vector<16x1xf32>
    %8 = tpu.iota {dimensions = array<i32: 1>} : vector<1x32xi32>
    %9 = arith.sitofp %8 : vector<1x32xi32> to vector<1x32xf32>
    %cst_2 = arith.constant -0.287823141 : f32
    %10 = vector.broadcast %cst_2 : f32 to vector<1x32xf32>
    %11 = arith.mulf %9, %10 : vector<1x32xf32>
    %12 = math.exp %11 : vector<1x32xf32>
    %13 = vector.broadcast %7 : vector<16x1xf32> to vector<16x32xf32>
    %14 = vector.broadcast %12 : vector<1x32xf32> to vector<16x32xf32>
    %15 = arith.mulf %13, %14 : vector<16x32xf32>
    %c2_i32 = arith.constant 2 : i32
    %c0_i32 = arith.constant 0 : i32
    %16 = arith.cmpi eq, %c2_i32, %c0_i32 : i32
    %c1_i32 = arith.constant 1 : i32
    %17 = arith.select %16, %c1_i32, %c2_i32 : i32
    %18 = vector.broadcast %17 : i32 to vector<1x32xi32>
    %19 = arith.remsi %8, %18 : vector<1x32xi32>
    %c0_i32_3 = arith.constant 0 : i32
    %20 = vector.broadcast %c0_i32_3 : i32 to vector<1x32xi32>
    %21 = arith.cmpi ne, %19, %20 : vector<1x32xi32>
    %c0_i32_4 = arith.constant 0 : i32
    %22 = vector.broadcast %c0_i32_4 : i32 to vector<1x32xi32>
    %23 = arith.cmpi slt, %19, %22 : vector<1x32xi32>
    %c0_i32_5 = arith.constant 0 : i32
    %24 = arith.cmpi slt, %17, %c0_i32_5 : i32
    %25 = vector.broadcast %24 : i1 to vector<1x32xi1>
    %26 = vector.broadcast %25 : vector<1x32xi1> to vector<1x32xi1>
    %27 = arith.xori %23, %26 : vector<1x32xi1>
    %28 = arith.andi %27, %21 : vector<1x32xi1>
    %29 = vector.broadcast %17 : i32 to vector<1x32xi32>
    %30 = arith.addi %19, %29 : vector<1x32xi32>
    %31 = arith.select %28, %30, %19 : vector<1x32xi1>, vector<1x32xi32>
    %c1_i32_6 = arith.constant 1 : i32
    %32 = vector.broadcast %c1_i32_6 : i32 to vector<1x32xi32>
    %33 = arith.cmpi eq, %31, %32 : vector<1x32xi32>
    %34 = math.sin %15 : vector<16x32xf32>
    %35 = math.cos %15 : vector<16x32xf32>
    %36 = vector.shape_cast %33 : vector<1x32xi1> to vector<1x32xi1>
    %37 = vector.broadcast %36 : vector<1x32xi1> to vector<16x32xi1>
    %38 = arith.select %37, %34, %35 : vector<16x32xi1>, vector<16x32xf32>
    %c0_7 = arith.constant 0 : index
    %c0_8 = arith.constant 0 : index
    %39 = vector.load %arg2[%c0_7, %c0_8] : memref<16x32xf32, #tpu.memory_space<vmem>>, vector<16x32xf32>
    tpu.vector_store %arg2[%c0_7, %c0_8], %38 {strides = array<i32>} : memref<16x32xf32, #tpu.memory_space<vmem>>, vector<16x32xf32>,
    return
  }
  func.func @transform_0(%arg0: i32) -> (i32, i32) {
    %c0_i32 = arith.constant 0 : i32
    %c0_i32_0 = arith.constant 0 : i32
    return %arg0, %c0_i32 : i32, i32
  }
  func.func @transform_1(%arg0: i32) -> (i32, i32) {
    %c0_i32 = arith.constant 0 : i32
    %c0_i32_0 = arith.constant 0 : i32
    return %arg0, %c0_i32 : i32, i32
  }
}

</mosaic_0001>

<bundles_post_ra>
// kernel: tpu_custom_call.1
= control target key start
LH: loop header
LB: loop body
LE: loop exit
PB: predicated region body
PF: predicated region fallthrough
CT: control target
= control target key end

     0   :  { %v559_v2 = vmov 0   ;;  %s671_s0 = inlined_call_operand.vmem [shape: f32[16,1], index: 0, kind: input, shape index: {}]   ;;  %s672_s1 = inlined_call_operand.hbm [shape: f32[16,32], index: 1, kind: output, shape index: {}]  }
   0x1   :  { %v9_v0 = vld [vmem:[%s671_s0] sm:$0xff]  ;;  %v10_v1 = vld [vmem:[%s671_s0 + $0x8] sm:$0xff]  ;;  %524 = vset.pattern.permute.xlu0 %v559_v2 }
   0x2   :  { %v12_v3 = vmul.f32 0.00027777778, %v9_v0  ;;  %v13_v4 = vmul.f32 0.00027777778, %v10_v1 }
   0x4   :  { %vm14_vm0 = vcmp.lt.f32.partialorder %v12_v3, 0.0  ;;  %v16_v5 = vceil.f32 %v12_v3  ;;  %v18_v6 = vfloor.f32 %v12_v3 }
   0x5   :  { %6 = vsyncpa [#allocation3], 0  ;;  %vm15_vm1 = vcmp.lt.f32.partialorder %v13_v4, 0.0  ;;  %v17_v7 = vceil.f32 %v13_v4  ;;  %v19_v8 = vfloor.f32 %v13_v4  ;;  %v22_v11 = vlaneseq  ;;  %s566_s0 = smov [#allocation2]  }
   0x6   :  { %v20_v9 = vsel %vm14_vm0, %v16_v5, %v18_v6  ;;  %v560_v37 = vmov 683565275   ;;  %v561_v41 = vmov 2475754826   ;;  %v562_v43 = vmov 2131351028  }
   0x7   :  { %30 = vperm.xlu0 %524, %v20_v9   ;;  %v21_v10 = vsel %vm15_vm1, %v17_v7, %v19_v8  ;;  %v585_v12 = vand.u32 127, %v22_v11  ;;  %v563_v45 = vmov 2102212464   ;;  %v564_v47 = vmov 920167782   ;;  %s479_s10 = sshll.u32 %s566_s0, 4  ;;  %s480_s10 = int_to_ptr.vmem [resolvable:$true] %s479_s10 }
   0x8   :  { %v565_v54 = vmov 1326507024   ;;  %s535_s11 = scalar_lea.vmem %s480_s10, 256  ;;  %p540_p1 = scmp.lt.s32.totalorder %s480_s10, %s480_s10 }
   0x9   :  { %v24_v13 = vcvt.s32.f32 %v585_v12  ;;  %p536_p0 = scmp.ne.s32.totalorder %s480_s10, %s535_s11  ;;  %p541_p2 = scmp.lt.s32.totalorder %s535_s11, %s535_s11 }
   0xb   :  { %35 = vperm.xlu0 %524, %v21_v10   ;;  %v25_v14 = vmul.f32 -0.28782314, %v24_v13  ;;  %p542_p3 = por %p541_p2, %p540_p1 }
   0xd   :  { %v26_v15 = vmul.f32 1.442695, %v25_v14  ;;  %p543_p4 = pnand %p542_p3, %p536_p0 }
   0xf   :  { %525 = vpow2.f32 %v26_v15 }
  0x19   :  { %v526_v16 = vpop.eup %525 }
  0x86   :  { %v31_v17 = vpop.permute.xlu0 %30 }
  0x87   :  { %v588_v18 = vmul.f32 %v526_v16, %v31_v17 }
  0x89   :  { %v53_v19 = vand.u32 2147483647, %v588_v18  ;;  %v56_v20 = vand.u32 2139095040, %v588_v18  ;;  %vm55_vm0 = vcmp.lt.s32.totalorder %v588_v18, 0 }
  0x8a   :  { %v36_v21 = vpop.permute.xlu0 %35 }
  0x8b   :  { %v57_v22 = vshrl.u32 %v56_v20, 23  ;;  %v592_v23 = vmul.f32 %v526_v16, %v36_v21  ;;  %v60_v24 = vand.u32 8388607, %v53_v19  ;;  %vm54_vm1 = vcmp.le.f32.partialorder %v53_v19, 0.7853982 }
  0x8d   :  { %v490_v25 = vadd.s32 4294967169, %v57_v22  ;;  %v160_v26 = vand.u32 2139095040, %v592_v23  ;;  %v61_v28 = vor.u32 8388608, %v60_v24  ;;  %v157_v30 = vand.u32 2147483647, %v592_v23 }
  0x8f   :  { %v63_v27 = vadd.s32 1, %v490_v25  ;;  %v161_v29 = vshrl.u32 %v160_v26, 23  ;;  %v598_v35 = vshll.u32 %v61_v28, 8  ;;  %v164_v39 = vand.u32 8388607, %v157_v30 }
  0x91   :  { %vm64_vm2 = vcmp.gt.s32.totalorder %v63_v27, 0  ;;  %v494_v32 = vadd.s32 4294967169, %v161_v29  ;;  %v165_v5 = vor.u32 8388608, %v164_v39 }
  0x92   :  { %v65_v31 = vsel %vm64_vm2, %v63_v27, 0  ;;  %vm159_vm2 = vcmp.lt.s32.totalorder %v592_v23, 0 }
  0x93   :  { %v66_v33 = vshrl.u32 %v65_v31, 5  ;;  %v67_v34 = vand.u32 31, %v65_v31  ;;  %v167_v40 = vadd.s32 1, %v494_v32  ;;  %v205_v21 = vshll.u32 %v165_v5, 8 }
  0x95   :  { %v68_v36 = vsub.s32 32, %v67_v34  ;;  %v70_v38 = vshll.u32 %v560_v37, %v67_v34  ;;  %v73_v42 = vshll.u32 %v561_v41, %v67_v34  ;;  %v76_v44 = vshll.u32 %v562_v43, %v67_v34 }
  0x96   :  { %v79_v46 = vshll.u32 %v563_v45, %v67_v34  ;;  %v82_v48 = vshll.u32 %v564_v47, %v67_v34  ;;  %vm85_vm3 = vcmp.lt.s32.totalorder %v66_v33, 1  ;;  %vm87_vm4 = vcmp.lt.s32.totalorder %v66_v33, 3 }
  0x97   :  { %v71_v49 = vshrl.u32 %v561_v41, %v68_v36  ;;  %v74_v50 = vshrl.u32 %v562_v43, %v68_v36  ;;  %v77_v51 = vshrl.u32 %v563_v45, %v68_v36  ;;  %v69_v52 = vshrl.u32 %v560_v37, %v68_v36 }
  0x98   :  { %v80_v53 = vshrl.u32 %v564_v47, %v68_v36  ;;  %v83_v55 = vshrl.u32 %v565_v54, %v68_v36  ;;  %vm168_vm5 = vcmp.gt.s32.totalorder %v167_v40, 0  ;;  %vm88_vm6 = vcmp.lt.s32.totalorder %v66_v33, 4 }
  0x99   :  { %v72_v56 = vor.u32 %v71_v49, %v70_v38  ;;  %v75_v57 = vor.u32 %v74_v50, %v73_v42  ;;  %v78_v58 = vor.u32 %v77_v51, %v76_v44  ;;  %v169_v61 = vsel %vm168_vm5, %v167_v40, 0 }
  0x9a   :  { %v81_v59 = vor.u32 %v80_v53, %v79_v46  ;;  %v84_v60 = vor.u32 %v83_v55, %v82_v48  ;;  %vm86_vm7 = vcmp.lt.s32.totalorder %v66_v33, 2  ;;  %v171_v8 = vand.u32 31, %v169_v61 }
  0x9b   :  { %v89_v62 = vsel %vm85_vm3, %v69_v52, %v72_v56  ;;  %v90_v63 = vsel %vm88_vm6, %v78_v58, 2102212464  ;;  %v93_v0 = vsel %vm85_vm3, %v72_v56, %v75_v57  ;;  %v97_v1 = vsel %vm85_vm3, %v75_v57, %v78_v58 }
  0x9c   :  { %v91_v2 = vsel %vm87_vm4, %v75_v57, %v90_v63  ;;  %v94_v3 = vsel %vm88_vm6, %v81_v59, 920167782  ;;  %v98_v4 = vsel %vm88_vm6, %v84_v60, 1326507024  ;;  %v170_v17 = vshrl.u32 %v169_v61, 5 }
  0x9d   :  { %v95_v6 = vsel %vm87_vm4, %v78_v58, %v94_v3  ;;  %v99_v7 = vsel %vm87_vm4, %v81_v59, %v98_v4  ;;  %v92_v9 = vsel %vm86_vm7, %v89_v62, %v91_v2  ;;  %v172_v20 = vsub.s32 32, %v171_v8 }
  0x9e   :  { %v96_v10 = vsel %vm86_vm7, %v93_v0, %v95_v6  ;;  %v100_v11 = vsel %vm86_vm7, %v97_v1, %v99_v7  ;;  %v108_v22 = vmul.u32 %v598_v35, %v92_v9  ;;  %v174_v24 = vshll.u32 %v560_v37, %v171_v8 }
  0x9f   :  { %v611_v13 = vmul.u32.u64.low %v598_v35, %v100_v11  ;;  %v612_v14 = vmul.u32.u64.high %v598_v35, %v100_v11, %v611_v13  ;;  %v615_v15 = vmul.u32.u64.low %v598_v35, %v96_v10  ;;  %v616_v16 = vmul.u32.u64.high %v598_v35, %v96_v10, %v615_v15 }
  0xa0   :  { %v177_v25 = vshll.u32 %v561_v41, %v171_v8  ;;  %v180_v26 = vshll.u32 %v562_v43, %v171_v8  ;;  %v175_v27 = vshrl.u32 %v561_v41, %v172_v20  ;;  %v178_v28 = vshrl.u32 %v562_v43, %v172_v20 }
  0xa1   :  { %v181_v29 = vshrl.u32 %v563_v45, %v172_v20  ;;  %v183_v31 = vshll.u32 %v563_v45, %v171_v8  ;;  %vm110_vm8 = vc.u32 %v612_v14, %v615_v15  ;;  %v111_v32 = vadd.s32 1, %v616_v16 }
  0xa2   :  { %v184_v33 = vshrl.u32 %v564_v47, %v172_v20  ;;  %v186_v34 = vshll.u32 %v564_v47, %v171_v8  ;;  %v176_v36 = vor.u32 %v175_v27, %v174_v24  ;;  %v179_v38 = vor.u32 %v178_v28, %v177_v25 }
  0xa3   :  { %v182_v39 = vor.u32 %v181_v29, %v180_v26  ;;  %v187_v40 = vshrl.u32 %v565_v54, %v172_v20  ;;  %v112_v35 = vsel %vm110_vm8, %v111_v32, %v616_v16  ;;  %vm189_vm9 = vcmp.lt.s32.totalorder %v170_v17, 1 }
  0xa4   :  { %v185_v42 = vor.u32 %v184_v33, %v183_v31  ;;  %vm192_vm10 = vcmp.lt.s32.totalorder %v170_v17, 4  ;;  %v113_v41 = vadd.s32 %v112_v35, %v108_v22  ;;  %vm191_vm11 = vcmp.lt.s32.totalorder %v170_v17, 3 }
  0xa5   :  { %v188_v43 = vor.u32 %v187_v40, %v186_v34  ;;  %v194_v44 = vsel %vm192_vm10, %v182_v39, 2102212464  ;;  %v173_v45 = vshrl.u32 %v560_v37, %v172_v20  ;;  %v197_v46 = vsel %vm189_vm9, %v176_v36, %v179_v38 }
  0xa6   :  { %v198_v48 = vsel %vm192_vm10, %v185_v42, 920167782  ;;  %v201_v49 = vsel %vm189_vm9, %v179_v38, %v182_v39  ;;  %v114_v50 = vadd.s32 536870912, %v113_v41  ;;  %vm190_vm12 = vcmp.lt.s32.totalorder %v170_v17, 2 }
  0xa7   :  { %v199_v47 = vsel %vm191_vm11, %v182_v39, %v198_v48  ;;  %v202_v51 = vsel %vm192_vm10, %v188_v43, 1326507024  ;;  %v193_v52 = vsel %vm189_vm9, %v173_v45, %v176_v36  ;;  %v195_v53 = vsel %vm191_vm11, %v179_v38, %v194_v44 }
  0xa8   :  { %v200_v54 = vsel %vm190_vm12, %v197_v46, %v199_v47  ;;  %v203_v55 = vsel %vm191_vm11, %v185_v42, %v202_v51  ;;  %v115_v56 = vshrl.u32 %v114_v50, 30  ;;  %v196_v62 = vsel %vm190_vm12, %v193_v52, %v195_v53 }
  0xa9   :  { %v204_v57 = vsel %vm190_vm12, %v201_v49, %v203_v55  ;;  %v626_v58 = vmul.u32.u64.low %v205_v21, %v200_v54  ;;  %v627_v59 = vmul.u32.u64.high %v205_v21, %v200_v54, %v626_v58  ;;  %v212_v1 = vmul.u32 %v205_v21, %v196_v62 }
  0xaa   :  { %v629_v60 = vmul.u32.u64.low %v205_v21, %v204_v57  ;;  %v630_v61 = vmul.u32.u64.high %v205_v21, %v204_v57, %v629_v60  ;;  %v116_v37 = vshll.u32 %v115_v56, 30  ;;  %v109_v16 = vadd.s32 %v615_v15, %v612_v14 }
  0xab   :  { %v215_v0 = vadd.s32 1, %v627_v59  ;;  %v139_v38 = vsub.s32 4, %v115_v56  ;;  %v44_v57 = vand.u32 1, %v585_v12  ;;  %vm158_vm3 = vcmp.le.f32.partialorder %v157_v30, 0.7853982 }
  0xac   :  { %v117_v63 = vsub.s32 %v113_v41, %v116_v37  ;;  %vm214_vm13 = vc.u32 %v630_v61, %v626_v58  ;;  %v213_v14 = vadd.s32 %v626_v58, %v630_v61  ;;  %vm471_vm6 = vcmask 261120  }
  0xad   :  { %v216_v3 = vsel %vm214_vm13, %v215_v0, %v627_v59  ;;  %v140_v45 = vsel %vm55_vm0, %v139_v38, %v115_v56  ;;  %vm647_vm4 = vcmp.eq.s32.totalorder %v44_v57, 1  ;;  %vm145_vm12 = vweird.f32 %v588_v18 }
  0xae   :  { %v119_v2 = vsub.s32 0, %v117_v63  ;;  %v217_v4 = vadd.s32 %v216_v3, %v212_v1  ;;  %v142_v50 = vsel %vm54_vm1, 0, %v140_v45 }
  0xaf   :  { %v146_v53 = vadd.s32 3, %v142_v50  ;;  %v354_v58 = vand.u32 3, %v142_v50 }
  0xb0   :  { %v491_v5 = vmin.u32 %v119_v2, %v117_v63  ;;  %v218_v6 = vadd.s32 536870912, %v217_v4 }
  0xb1   :  { %v147_v19 = vand.u32 3, %v146_v53  ;;  %vm359_vm5 = vcmp.eq.s32.totalorder %v354_v58, 2  ;;  %vm356_vm9 = vcmp.eq.s32.totalorder %v354_v58, 0  ;;  %vm355_vm11 = vcmp.lt.s32.totalorder %v354_v58, 2 }
  0xb2   :  { %v121_v7 = vclz %v491_v5  ;;  %v219_v8 = vshrl.u32 %v218_v6, 30 }
  0xb3   :  { %vm152_vm7 = vcmp.eq.s32.totalorder %v147_v19, 2  ;;  %vm149_vm8 = vcmp.eq.s32.totalorder %v147_v19, 0  ;;  %vm148_vm10 = vcmp.lt.s32.totalorder %v147_v19, 2 }
  0xb4   :  { %v492_v9 = vadd.s32 4294967294, %v121_v7  ;;  %v220_v10 = vshll.u32 %v219_v8, 30  ;;  %v243_v55 = vsub.s32 4, %v219_v8 }
  0xb6   :  { %vm493_vm14 = vcmp.lt.s32.totalorder %v492_v9, 0  ;;  %v221_v13 = vsub.s32 %v217_v4, %v220_v10  ;;  %v244_v60 = vsel %vm159_vm2, %v243_v55, %v219_v8 }
  0xb7   :  { %v124_v11 = vsel %vm493_vm14, 0, %v492_v9  ;;  %v246_v0 = vsel %vm158_vm3, 0, %v244_v60 }
  0xb8   :  { %v125_v17 = vsub.s32 32, %v124_v11  ;;  %v129_v20 = vsub.s32 4294967266, %v124_v11  ;;  %v223_v21 = vsub.s32 0, %v221_v13  ;;  %v126_v22 = vshll.u32 %v117_v63, %v124_v11 }
  0xb9   :  { %v250_v5 = vadd.s32 3, %v246_v0 }
  0xba   :  { %v127_v24 = vshrl.u32 %v109_v16, %v125_v17  ;;  %v130_v25 = vadd.s32 127, %v129_v20  ;;  %v495_v26 = vmin.u32 %v223_v21, %v221_v13 }
  0xbb   :  { %v251_v11 = vand.u32 3, %v250_v5 }
  0xbc   :  { %v128_v27 = vor.u32 %v127_v24, %v126_v22  ;;  %v131_v28 = vshll.u32 %v130_v25, 23  ;;  %v225_v29 = vclz %v495_v26 }
  0xbd   :  { %vm256_vm13 = vcmp.eq.s32.totalorder %v251_v11, 2 }
  0xbe   :  { %v132_v31 = vor.u32 4788187, %v131_v28  ;;  %v496_v32 = vadd.s32 4294967294, %v225_v29  ;;  %v135_v34 = vcvt.s32.f32 %v128_v27 }
  0xc0   :  { %v133_v33 = vand.u32 2147483647, %v132_v31  ;;  %vm497_vm15 = vcmp.lt.s32.totalorder %v496_v32, 0 }
  0xc1   :  { %v228_v39 = vsel %vm497_vm15, 0, %v496_v32  ;;  %vm253_vm15 = vcmp.eq.s32.totalorder %v251_v11, 0 }
  0xc2   :  { %v136_v36 = vmul.f32 %v135_v34, %v133_v33  ;;  %v229_v15 = vsub.s32 32, %v228_v39  ;;  %v233_v40 = vsub.s32 4294967266, %v228_v39  ;;  %v230_v42 = vshll.u32 %v221_v13, %v228_v39 }
  0xc3   :  { %v457_v13 = vand.u32 3, %v246_v0 }
  0xc4   :  { %v137_v35 = vxor.u32 2147483648, %v136_v36  ;;  %v231_v41 = vshrl.u32 %v213_v14, %v229_v15  ;;  %v234_v43 = vadd.s32 127, %v233_v40 }
  0xc5   :  { %vm462_vm14 = vcmp.eq.s32.totalorder %v457_v13, 2 }
  0xc6   :  { %v138_v44 = vsel %vm55_vm0, %v137_v35, %v136_v36  ;;  %v232_v48 = vor.u32 %v231_v41, %v230_v42  ;;  %v235_v49 = vshll.u32 %v234_v43, 23  ;;  %vm459_vm0 = vcmp.eq.s32.totalorder %v457_v13, 0 }
  0xc7   :  { %v141_v46 = vsel %vm54_vm1, %v588_v18, %v138_v44  ;;  %vm252_vm1 = vcmp.lt.s32.totalorder %v251_v11, 2 }
  0xc8   :  { %527 = vcosq.f32 %v141_v46  ;;  %v236_v47 = vor.u32 4788187, %v235_v49  ;;  %v239_v52 = vcvt.s32.f32 %v232_v48 }
  0xc9   :  { %529 = vsinq.f32 %v141_v46 }
  0xca   :  { %v237_v51 = vand.u32 2147483647, %v236_v47 }
  0xcc   :  { %v240_v54 = vmul.f32 %v239_v52, %v237_v51 }
  0xce   :  { %v241_v59 = vxor.u32 2147483648, %v240_v54 }
  0xd0   :  { %v242_v56 = vsel %vm159_vm2, %v241_v59, %v240_v54  ;;  %vm458_vm2 = vcmp.lt.s32.totalorder %v457_v13, 2 }
  0xd1   :  { %v245_v37 = vsel %vm158_vm3, %v592_v23, %v242_v56  ;;  %vm249_vm3 = vweird.f32 %v592_v23 }
  0xd2   :  { %v528_v61 = vpop.eup %527  ;;  %531 = vcosq.f32 %v245_v37 }
  0xd3   :  { %v530_v63 = vpop.eup %529  ;;  %v153_v12 = vxor.u32 2147483648, %v528_v61  ;;  %533 = vsinq.f32 %v245_v37 }
  0xd4   :  { %v150_v1 = vxor.u32 2147483648, %v530_v63 }
  0xd5   :  { %v154_v30 = vsel %vm152_vm7, %v153_v12, %v530_v63  ;;  %v361_v2 = vsel %vm359_vm5, %v153_v12, %v530_v63 }
  0xd6   :  { %v151_v3 = vsel %vm149_vm8, %v528_v61, %v150_v1  ;;  %v358_v4 = vsel %vm356_vm9, %v528_v61, %v150_v1 }
  0xd7   :  { %v155_v6 = vsel %vm148_vm10, %v151_v3, %v154_v30  ;;  %v362_v7 = vsel %vm355_vm11, %v358_v4, %v361_v2 }
  0xd8   :  { %v156_v8 = vsel %vm145_vm12, nan, %v155_v6  ;;  %v363_v9 = vsel %vm145_vm12, nan, %v362_v7 }
  0xd9   :  { %v469_v10 = vsel %vm647_vm4, %v156_v8, %v363_v9 }
  0xda   :  { %472 = vst.msk [vmem:[#allocation2] sm:$0xff] %vm471_vm6, %v469_v10 }
  0xdc   :  { %v532_v16 = vpop.eup %531 }
  0xdd   :  { %v534_v17 = vpop.eup %533  ;;  %v257_v20 = vxor.u32 2147483648, %v532_v16 }
  0xde   :  { %v254_v21 = vxor.u32 2147483648, %v534_v17 }
  0xdf   :  { %v258_v22 = vsel %vm256_vm13, %v257_v20, %v534_v17  ;;  %v464_v18 = vsel %vm462_vm14, %v257_v20, %v534_v17 }
  0xe0   :  { %v255_v24 = vsel %vm253_vm15, %v532_v16, %v254_v21  ;;  %v461_v25 = vsel %vm459_vm0, %v532_v16, %v254_v21 }
  0xe1   :  { %v259_v26 = vsel %vm252_vm1, %v255_v24, %v258_v22  ;;  %v465_v27 = vsel %vm458_vm2, %v461_v25, %v464_v18 }
  0xe2   :  { %v260_v28 = vsel %vm249_vm3, nan, %v259_v26  ;;  %v466_v29 = vsel %vm249_vm3, nan, %v465_v27 }
  0xe3   :  { %v470_v31 = vsel %vm647_vm4, %v260_v28, %v466_v29 }
  0xe4   :  { %473 = vst.msk [vmem:[#allocation2 + $0x8] sm:$0xff] %vm471_vm6, %v470_v31 }
  0xe5   :  { %546 = shalt.err (!%p543_p4)
}
  0xe6   :  { %s547_s14 = scalar_lea.hbm %s672_s1, 256 }
  0xe7   :  { %p548_p5 = scmp.ne.s32.totalorder %s672_s1, %s547_s14  ;;  %p551_p6 = scmp.lt.u32.totalorder %s547_s14, %s672_s1 }
  0xe9   :  { %p553_p7 = pnand %p551_p6, %p548_p5 }
  0xeb   :  { %556 = shalt.err (!%p553_p7)
}
  0xec   :  { %s567_s19 = smov 128   ;;  %s568_s20 = smov 8  }
  0xed   :  { %485 = dma.vmem_to_hbm [thread:$0]  %s480_s10, 256, %s672_s1, [#allocation3], %s567_s19, %s567_s19, %s568_s20  }
  0xee   :  { %557 = dma.done.wait [#allocation3], 256  }
  0xef   :  { %558 = vsyncadd [#allocation3], 4294967040 }
  0xf0   :  { %489 = vsyncpa [#allocation3], 1 }

</bundles_post_ra>
